<compile_context>
chip_gen: v7x
topology: tpu7x:2x2x1
jax: 0.10.0
libtpu: 0.0.40
codegen_flags: <defaults>
</compile_context>

<pallas_src>
import jax
import jax.numpy as jnp
from jax.experimental import pallas as pl
from jax.experimental.pallas import tpu as pltpu


def _autoencoder_kernel(x_ref,
                        w1, b1, w2, b2, w3, b3,
                        w4, b4, w5, b5, w6, b6,
                        out_ref):
    """Fused encoder+decoder forward for one transposed batch tile (features, batch)."""

    def layer(h_bf16, w_ref, b_ref, relu):
        # (out, in) @ (in, batch) -> (out, batch); bf16 inputs, f32 accumulation on MXU.
        acc = jnp.dot(w_ref[...], h_bf16, preferred_element_type=jnp.float32)
        acc = acc + b_ref[...]           # (out, 1) broadcasts across the batch lanes
        if relu:
            acc = jnp.maximum(acc, 0.0)
        return acc

    h = x_ref[...]                                      # (input_dim, bt) bf16
    # ---- encoder ----
    h = layer(h, w1, b1, True).astype(jnp.bfloat16)
    h = layer(h, w2, b2, True).astype(jnp.bfloat16)
    z = layer(h, w3, b3, False).astype(jnp.bfloat16)    # bottleneck (no ReLU)
    # ---- decoder ----
    h = layer(z, w4, b4, True).astype(jnp.bfloat16)
    h = layer(h, w5, b5, True).astype(jnp.bfloat16)
    y = layer(h, w6, b6, False)                         # no final ReLU, keep f32
    out_ref[...] = y.astype(out_ref.dtype)


def autoencoder_forward(x, params, *, batch_tile=128):
    """x: (B, input_dim) f32. params: 6 x (W, b) with W=(out,in) bf16, b=(out,1) f32."""
    B, input_dim = x.shape
    assert batch_tile % 128 == 0, "batch tile maps to lanes -> multiple of 128"

    # Pad the batch up to a tile multiple (sliced off at the end).
    B_pad = -(-B // batch_tile) * batch_tile
    if B_pad != B:
        x = jnp.pad(x, ((0, B_pad - B), (0, 0)))

    # Transposed, bf16 input slab: batch on lanes (lane-dense loads/stores, MXU N=bt).
    xT = x.T.astype(jnp.bfloat16)                        # (input_dim, B_pad)

    flat = []
    in_specs = [pl.BlockSpec((input_dim, batch_tile), lambda i: (0, i))]
    for (w, b) in params:
        flat.append(w)
        flat.append(b)
        # Constant block index -> fetched once, kept resident across grid steps.
        in_specs.append(pl.BlockSpec(w.shape, lambda i: (0, 0)))
        in_specs.append(pl.BlockSpec(b.shape, lambda i: (0, 0)))
    out_spec = pl.BlockSpec((input_dim, batch_tile), lambda i: (0, i))

    # Advisory cost model for XLA's scheduler around the custom call.
    flops = sum(2 * B_pad * w.shape[0] * w.shape[1] for w, _ in params)
    bytes_accessed = (xT.size * xT.dtype.itemsize
                      + B_pad * input_dim * 4
                      + sum(w.size * w.dtype.itemsize + b.size * b.dtype.itemsize
                            for w, b in params))
    cost = pl.CostEstimate(flops=flops, transcendentals=0,
                           bytes_accessed=bytes_accessed)

    outT = pl.pallas_call(
        _autoencoder_kernel,
        out_shape=jax.ShapeDtypeStruct((input_dim, B_pad), jnp.float32),
        grid_spec=pltpu.PrefetchScalarGridSpec(
            num_scalar_prefetch=0,
            grid=(B_pad // batch_tile,),
            in_specs=in_specs,
            out_specs=out_spec,
        ),
        compiler_params=pltpu.CompilerParams(
            dimension_semantics=("parallel",),
            vmem_limit_bytes=32 << 20,
        ),
        cost_estimate=cost,
    )(xT, *flat)

    out = outT.T                                         # back to (B_pad, input_dim)
    if B_pad != B:
        out = out[:B]
    return out


def init_params(key, input_dim, output_dim):
    """PyTorch-Linear-style uniform(-1/sqrt(fan_in), +1/sqrt(fan_in)) init.
    Weights in PyTorch layout (out_features, in_features) cast to bf16 for the MXU;
    biases kept as (out_features, 1) f32 column vectors for the transposed layout."""
    h1 = input_dim // 2
    h2 = input_dim // 4
    dims = [(input_dim, h1), (h1, h2), (h2, output_dim),       # encoder
            (output_dim, h2), (h2, h1), (h1, input_dim)]       # decoder
    params = []
    for (fan_in, fan_out) in dims:
        key, kw, kb = jax.random.split(key, 3)
        bound = 1.0 / (fan_in ** 0.5)
        w = jax.random.uniform(kw, (fan_out, fan_in), jnp.float32, -bound, bound)
        b = jax.random.uniform(kb, (fan_out, 1), jnp.float32, -bound, bound)
        params.append((w.astype(jnp.bfloat16), b))
    return params


def reference_forward(x, params):
    """Pure-JAX reference with identical bf16-weight / f32-accumulate numerics."""
    h = x.astype(jnp.bfloat16)
    out = None
    for li, (w, b) in enumerate(params):
        acc = jnp.dot(h, w.T, preferred_element_type=jnp.float32) + b[:, 0]
        if li not in (2, 5):          # ReLU except bottleneck output and final layer
            acc = jnp.maximum(acc, 0.0)
        if li == 5:
            out = acc
        else:
            h = acc.astype(jnp.bfloat16)
    return out


if __name__ == "__main__":
    input_dim = 64
    output_dim = 8
    batch = 256          # 2 grid steps of 128 -> real pipelining + both TCs where present
    batch_tile = 128

    key = jax.random.PRNGKey(0)
    key, kx = jax.random.split(key)
    x = jax.random.normal(kx, (batch, input_dim), jnp.float32)

    params = init_params(key, input_dim, output_dim)

    out = autoencoder_forward(x, params, batch_tile=batch_tile)
    out = jax.block_until_ready(out)

    ref = reference_forward(x, params)
    assert out.shape == (batch, input_dim)
    assert jnp.allclose(out, ref, atol=1e-2, rtol=1e-2), "mismatch vs pure-JAX reference"

    print("KERNEL_OK")
</pallas_src>

<mosaic_0001>
module attributes {stable_mosaic.version = 11 : i64} {
  func.func @_autoencoder_kernel(%arg0: i32, %arg1: memref<64x128xbf16, #tpu.memory_space<vmem>>, %arg2: memref<32x64xbf16, #tpu.memory_space<vmem>>, %arg3: memref<32x1xf32, #tpu.memory_space<vmem>>, %arg4: memref<16x32xbf16, #tpu.memory_space<vmem>>, %arg5: memref<16x1xf32, #tpu.memory_space<vmem>>, %arg6: memref<8x16xbf16, #tpu.memory_space<vmem>>, %arg7: memref<8x1xf32, #tpu.memory_space<vmem>>, %arg8: memref<16x8xbf16, #tpu.memory_space<vmem>>, %arg9: memref<16x1xf32, #tpu.memory_space<vmem>>, %arg10: memref<32x16xbf16, #tpu.memory_space<vmem>>, %arg11: memref<32x1xf32, #tpu.memory_space<vmem>>, %arg12: memref<64x32xbf16, #tpu.memory_space<vmem>>, %arg13: memref<64x1xf32, #tpu.memory_space<vmem>>, %arg14: memref<64x128xf32, #tpu.memory_space<vmem>>) attributes {dimension_semantics = [#tpu.dimension_semantics<parallel>], iteration_bounds = array<i64: 2>, scalar_prefetch = 0 : i64, scratch_operands = 0 : i64, tpu.core_type = #tpu.core_type<tc>, window_params = [{transform_indices = @transform_0, window_bounds = array<i64: 64, 128>}, {pipeline_mode = #tpu.pipeline_mode<synchronous>, transform_indices = @transform_1, window_bounds = array<i64: 32, 64>}, {pipeline_mode = #tpu.pipeline_mode<synchronous>, transform_indices = @transform_2, window_bounds = array<i64: 32, 1>}, {pipeline_mode = #tpu.pipeline_mode<synchronous>, transform_indices = @transform_3, window_bounds = array<i64: 16, 32>}, {pipeline_mode = #tpu.pipeline_mode<synchronous>, transform_indices = @transform_4, window_bounds = array<i64: 16, 1>}, {pipeline_mode = #tpu.pipeline_mode<synchronous>, transform_indices = @transform_5, window_bounds = array<i64: 8, 16>}, {pipeline_mode = #tpu.pipeline_mode<synchronous>, transform_indices = @transform_6, window_bounds = array<i64: 8, 1>}, {pipeline_mode = #tpu.pipeline_mode<synchronous>, transform_indices = @transform_7, window_bounds = array<i64: 16, 8>}, {pipeline_mode = #tpu.pipeline_mode<synchronous>, transform_indices = @transform_8, window_bounds = array<i64: 16, 1>}, {pipeline_mode = #tpu.pipeline_mode<synchronous>, transform_indices = @transform_9, window_bounds = array<i64: 32, 16>}, {pipeline_mode = #tpu.pipeline_mode<synchronous>, transform_indices = @transform_10, window_bounds = array<i64: 32, 1>}, {pipeline_mode = #tpu.pipeline_mode<synchronous>, transform_indices = @transform_11, window_bounds = array<i64: 64, 32>}, {pipeline_mode = #tpu.pipeline_mode<synchronous>, transform_indices = @transform_12, window_bounds = array<i64: 64, 1>}, {transform_indices = @transform_13, window_bounds = array<i64: 64, 128>}]} {
    %c0 = arith.constant 0 : index
    %c0_0 = arith.constant 0 : index
    %0 = vector.load %arg1[%c0, %c0_0] : memref<64x128xbf16, #tpu.memory_space<vmem>>, vector<64x128xbf16>
    %c0_1 = arith.constant 0 : index
    %c0_2 = arith.constant 0 : index
    %1 = vector.load %arg2[%c0_1, %c0_2] : memref<32x64xbf16, #tpu.memory_space<vmem>>, vector<32x64xbf16>
    %cst = arith.constant dense<0.000000e+00> : vector<32x128xf32>
    %2 = tpu.matmul %1, %0, %cst {dimension_numbers = #tpu.dot_dimension_numbers<[1], [0], [0], [1], [0, 0, 1, 1], [], []>} : vector<32x64xbf16>, vector<64x128xbf16>, vector<32x128xf32> -> vector<32x128xf32>
    %c0_3 = arith.constant 0 : index
    %c0_4 = arith.constant 0 : index
    %3 = vector.load %arg3[%c0_3, %c0_4] : memref<32x1xf32, #tpu.memory_space<vmem>>, vector<32x1xf32>
    %4 = vector.broadcast %3 : vector<32x1xf32> to vector<32x128xf32>
    %5 = arith.addf %2, %4 : vector<32x128xf32>
    %cst_5 = arith.constant 0.000000e+00 : f32
    %6 = vector.broadcast %cst_5 : f32 to vector<32x128xf32>
    %7 = arith.maximumf %5, %6 : vector<32x128xf32>
    %8 = arith.truncf %7 : vector<32x128xf32> to vector<32x128xbf16>
    %c0_6 = arith.constant 0 : index
    %c0_7 = arith.constant 0 : index
    %9 = vector.load %arg4[%c0_6, %c0_7] : memref<16x32xbf16, #tpu.memory_space<vmem>>, vector<16x32xbf16>
    %cst_8 = arith.constant dense<0.000000e+00> : vector<16x128xf32>
    %10 = tpu.matmul %9, %8, %cst_8 {dimension_numbers = #tpu.dot_dimension_numbers<[1], [0], [0], [1], [0, 0, 1, 1], [], []>} : vector<16x32xbf16>, vector<32x128xbf16>, vector<16x128xf32> -> vector<16x128xf32>
    %c0_9 = arith.constant 0 : index
    %c0_10 = arith.constant 0 : index
    %11 = vector.load %arg5[%c0_9, %c0_10] : memref<16x1xf32, #tpu.memory_space<vmem>>, vector<16x1xf32>
    %12 = vector.broadcast %11 : vector<16x1xf32> to vector<16x128xf32>
    %13 = arith.addf %10, %12 : vector<16x128xf32>
    %cst_11 = arith.constant 0.000000e+00 : f32
    %14 = vector.broadcast %cst_11 : f32 to vector<16x128xf32>
    %15 = arith.maximumf %13, %14 : vector<16x128xf32>
    %16 = arith.truncf %15 : vector<16x128xf32> to vector<16x128xbf16>
    %c0_12 = arith.constant 0 : index
    %c0_13 = arith.constant 0 : index
    %17 = vector.load %arg6[%c0_12, %c0_13] : memref<8x16xbf16, #tpu.memory_space<vmem>>, vector<8x16xbf16>
    %cst_14 = arith.constant dense<0.000000e+00> : vector<8x128xf32>
    %18 = tpu.matmul %17, %16, %cst_14 {dimension_numbers = #tpu.dot_dimension_numbers<[1], [0], [0], [1], [0, 0, 1, 1], [], []>} : vector<8x16xbf16>, vector<16x128xbf16>, vector<8x128xf32> -> vector<8x128xf32>
    %c0_15 = arith.constant 0 : index
    %c0_16 = arith.constant 0 : index
    %19 = vector.load %arg7[%c0_15, %c0_16] : memref<8x1xf32, #tpu.memory_space<vmem>>, vector<8x1xf32>
    %20 = vector.broadcast %19 : vector<8x1xf32> to vector<8x128xf32>
    %21 = arith.addf %18, %20 : vector<8x128xf32>
    %22 = arith.truncf %21 : vector<8x128xf32> to vector<8x128xbf16>
    %c0_17 = arith.constant 0 : index
    %c0_18 = arith.constant 0 : index
    %23 = vector.load %arg8[%c0_17, %c0_18] : memref<16x8xbf16, #tpu.memory_space<vmem>>, vector<16x8xbf16>
    %cst_19 = arith.constant dense<0.000000e+00> : vector<16x128xf32>
    %24 = tpu.matmul %23, %22, %cst_19 {dimension_numbers = #tpu.dot_dimension_numbers<[1], [0], [0], [1], [0, 0, 1, 1], [], []>} : vector<16x8xbf16>, vector<8x128xbf16>, vector<16x128xf32> -> vector<16x128xf32>
    %c0_20 = arith.constant 0 : index
    %c0_21 = arith.constant 0 : index
    %25 = vector.load %arg9[%c0_20, %c0_21] : memref<16x1xf32, #tpu.memory_space<vmem>>, vector<16x1xf32>
    %26 = vector.broadcast %25 : vector<16x1xf32> to vector<16x128xf32>
    %27 = arith.addf %24, %26 : vector<16x128xf32>
    %cst_22 = arith.constant 0.000000e+00 : f32
    %28 = vector.broadcast %cst_22 : f32 to vector<16x128xf32>
    %29 = arith.maximumf %27, %28 : vector<16x128xf32>
    %30 = arith.truncf %29 : vector<16x128xf32> to vector<16x128xbf16>
    %c0_23 = arith.constant 0 : index
    %c0_24 = arith.constant 0 : index
    %31 = vector.load %arg10[%c0_23, %c0_24] : memref<32x16xbf16, #tpu.memory_space<vmem>>, vector<32x16xbf16>
    %cst_25 = arith.constant dense<0.000000e+00> : vector<32x128xf32>
    %32 = tpu.matmul %31, %30, %cst_25 {dimension_numbers = #tpu.dot_dimension_numbers<[1], [0], [0], [1], [0, 0, 1, 1], [], []>} : vector<32x16xbf16>, vector<16x128xbf16>, vector<32x128xf32> -> vector<32x128xf32>
    %c0_26 = arith.constant 0 : index
    %c0_27 = arith.constant 0 : index
    %33 = vector.load %arg11[%c0_26, %c0_27] : memref<32x1xf32, #tpu.memory_space<vmem>>, vector<32x1xf32>
    %34 = vector.broadcast %33 : vector<32x1xf32> to vector<32x128xf32>
    %35 = arith.addf %32, %34 : vector<32x128xf32>
    %cst_28 = arith.constant 0.000000e+00 : f32
    %36 = vector.broadcast %cst_28 : f32 to vector<32x128xf32>
    %37 = arith.maximumf %35, %36 : vector<32x128xf32>
    %38 = arith.truncf %37 : vector<32x128xf32> to vector<32x128xbf16>
    %c0_29 = arith.constant 0 : index
    %c0_30 = arith.constant 0 : index
    %39 = vector.load %arg12[%c0_29, %c0_30] : memref<64x32xbf16, #tpu.memory_space<vmem>>, vector<64x32xbf16>
    %cst_31 = arith.constant dense<0.000000e+00> : vector<64x128xf32>
    %40 = tpu.matmul %39, %38, %cst_31 {dimension_numbers = #tpu.dot_dimension_numbers<[1], [0], [0], [1], [0, 0, 1, 1], [], []>} : vector<64x32xbf16>, vector<32x128xbf16>, vector<64x128xf32> -> vector<64x128xf32>
    %c0_32 = arith.constant 0 : index
    %c0_33 = arith.constant 0 : index
    %41 = vector.load %arg13[%c0_32, %c0_33] : memref<64x1xf32, #tpu.memory_space<vmem>>, vector<64x1xf32>
    %42 = vector.broadcast %41 : vector<64x1xf32> to vector<64x128xf32>
    %43 = arith.addf %40, %42 : vector<64x128xf32>
    %c0_34 = arith.constant 0 : index
    %c0_35 = arith.constant 0 : index
    %44 = vector.load %arg14[%c0_34, %c0_35] : memref<64x128xf32, #tpu.memory_space<vmem>>, vector<64x128xf32>
    tpu.vector_store %arg14[%c0_34, %c0_35], %43 {strides = array<i32>} : memref<64x128xf32, #tpu.memory_space<vmem>>, vector<64x128xf32>,
    return
  }
  func.func @transform_0(%arg0: i32) -> (i32, i32) {
    %c0_i32 = arith.constant 0 : i32
    %c0_i32_0 = arith.constant 0 : i32
    return %c0_i32, %arg0 : i32, i32
  }
  func.func @transform_1(%arg0: i32) -> (i32, i32) {
    %c0_i32 = arith.constant 0 : i32
    %c0_i32_0 = arith.constant 0 : i32
    %c0_i32_1 = arith.constant 0 : i32
    return %c0_i32, %c0_i32_0 : i32, i32
  }
  func.func @transform_2(%arg0: i32) -> (i32, i32) {
    %c0_i32 = arith.constant 0 : i32
    %c0_i32_0 = arith.constant 0 : i32
    %c0_i32_1 = arith.constant 0 : i32
    return %c0_i32, %c0_i32_0 : i32, i32
  }
  func.func @transform_3(%arg0: i32) -> (i32, i32) {
    %c0_i32 = arith.constant 0 : i32
    %c0_i32_0 = arith.constant 0 : i32
    %c0_i32_1 = arith.constant 0 : i32
    return %c0_i32, %c0_i32_0 : i32, i32
  }
  func.func @transform_4(%arg0: i32) -> (i32, i32) {
    %c0_i32 = arith.constant 0 : i32
    %c0_i32_0 = arith.constant 0 : i32
    %c0_i32_1 = arith.constant 0 : i32
    return %c0_i32, %c0_i32_0 : i32, i32
  }
  func.func @transform_5(%arg0: i32) -> (i32, i32) {
    %c0_i32 = arith.constant 0 : i32
    %c0_i32_0 = arith.constant 0 : i32
    %c0_i32_1 = arith.constant 0 : i32
    return %c0_i32, %c0_i32_0 : i32, i32
  }
  func.func @transform_6(%arg0: i32) -> (i32, i32) {
    %c0_i32 = arith.constant 0 : i32
    %c0_i32_0 = arith.constant 0 : i32
    %c0_i32_1 = arith.constant 0 : i32
    return %c0_i32, %c0_i32_0 : i32, i32
  }
  func.func @transform_7(%arg0: i32) -> (i32, i32) {
    %c0_i32 = arith.constant 0 : i32
    %c0_i32_0 = arith.constant 0 : i32
    %c0_i32_1 = arith.constant 0 : i32
    return %c0_i32, %c0_i32_0 : i32, i32
  }
  func.func @transform_8(%arg0: i32) -> (i32, i32) {
    %c0_i32 = arith.constant 0 : i32
    %c0_i32_0 = arith.constant 0 : i32
    %c0_i32_1 = arith.constant 0 : i32
    return %c0_i32, %c0_i32_0 : i32, i32
  }
  func.func @transform_9(%arg0: i32) -> (i32, i32) {
    %c0_i32 = arith.constant 0 : i32
    %c0_i32_0 = arith.constant 0 : i32
    %c0_i32_1 = arith.constant 0 : i32
    return %c0_i32, %c0_i32_0 : i32, i32
  }
  func.func @transform_10(%arg0: i32) -> (i32, i32) {
    %c0_i32 = arith.constant 0 : i32
    %c0_i32_0 = arith.constant 0 : i32
    %c0_i32_1 = arith.constant 0 : i32
    return %c0_i32, %c0_i32_0 : i32, i32
  }
  func.func @transform_11(%arg0: i32) -> (i32, i32) {
    %c0_i32 = arith.constant 0 : i32
    %c0_i32_0 = arith.constant 0 : i32
    %c0_i32_1 = arith.constant 0 : i32
    return %c0_i32, %c0_i32_0 : i32, i32
  }
  func.func @transform_12(%arg0: i32) -> (i32, i32) {
    %c0_i32 = arith.constant 0 : i32
    %c0_i32_0 = arith.constant 0 : i32
    %c0_i32_1 = arith.constant 0 : i32
    return %c0_i32, %c0_i32_0 : i32, i32
  }
  func.func @transform_13(%arg0: i32) -> (i32, i32) {
    %c0_i32 = arith.constant 0 : i32
    %c0_i32_0 = arith.constant 0 : i32
    return %c0_i32, %arg0 : i32, i32
  }
}

</mosaic_0001>

<bundles_post_ra>
// kernel: tpu_custom_call.1
= control target key start
LH: loop header
LB: loop body
LE: loop exit
PB: predicated region body
PF: predicated region fallthrough
CT: control target
= control target key end

     0   :  { %s1704_s0 = inlined_call_operand.vmem [shape: bf16[64,256], index: 0, kind: input, shape index: {}]   ;;  %s1705_s1 = inlined_call_operand.vmem [shape: bf16[32,64], index: 1, kind: input, shape index: {}]   ;;  %s1706_s2 = inlined_call_operand.vmem [shape: f32[32,1], index: 2, kind: input, shape index: {}]   ;;  %s1707_s3 = inlined_call_operand.vmem [shape: bf16[16,32], index: 3, kind: input, shape index: {}]   ;;  %s1708_s4 = inlined_call_operand.vmem [shape: f32[16,1], index: 4, kind: input, shape index: {}]   ;;  %s1709_s5 = inlined_call_operand.vmem [shape: bf16[8,16], index: 5, kind: input, shape index: {}]   ;;  %s1710_s6 = inlined_call_operand.vmem [shape: f32[8,1], index: 6, kind: input, shape index: {}]   ;;  %s1711_s7 = inlined_call_operand.vmem [shape: bf16[16,8], index: 7, kind: input, shape index: {}]   ;;  %s1712_s8 = inlined_call_operand.vmem [shape: f32[16,1], index: 8, kind: input, shape index: {}]   ;;  %s1713_s9 = inlined_call_operand.vmem [shape: bf16[32,16], index: 9, kind: input, shape index: {}]   ;;  %s1714_s10 = inlined_call_operand.vmem [shape: f32[32,1], index: 10, kind: input, shape index: {}]   ;;  %s1715_s11 = inlined_call_operand.vmem [shape: bf16[64,32], index: 11, kind: input, shape index: {}]   ;;  %s1716_s12 = inlined_call_operand.vmem [shape: f32[64,1], index: 12, kind: input, shape index: {}]   ;;  %s1717_s13 = inlined_call_operand.hbm [shape: f32[64,256], index: 13, kind: output, shape index: {}]  }
   0x1   :  { %1719 = sst [smem:[#allocation6_spill]] %s1704_s0 }
   0x2   :  { %1720 = sst [smem:[#allocation7_spill]] %s1705_s1 }
   0x3   :  { %1721 = sst [smem:[#allocation8_spill]] %s1706_s2 }
   0x4   :  { %18 = vsyncpa [#allocation4], 0 }
   0x5   :  { %20 = vsyncpa [#allocation4 + $0x1], 0  ;;  %s1483_s25 = smov 0   ;;  %s1485_s26 = smov 0  }
   0x6   :  { %s1487_s27 = smov 0   ;;  %s1489_s28 = smov 0  }
   0x7 LB: > { %s1718_s29 = sadd.s32 4294967295, %s1404_s28   ;;  %s1172_s30 = sadd.s32 4294967294, %s1404_s28   ;;  %s1404_s28 = sphi %s1489_s28, %s1732_s28   ;;  %s1400_s27 = sphi %s1487_s27, %s1731_s27   ;;  %s1396_s26 = sphi %s1485_s26, %s1730_s26   ;;  %s1392_s25 = sphi %s1483_s25, %s1729_s25  }
   0x8   : > { %s1506_s14 = sadd.s32 1, %s1404_s28   ;;  %s33_s15 = sadd.s32 1, %s1400_s27 }
   0x9   : > { %s30_s16 = ssub.s32 %s1404_s28, %s1506_s14  ;;  %p40_p0 = scmp.ne.s32.totalorder %s1400_s27, %s1396_s26 }
   0xa   : > { %p31_p1 = scmp.eq.s32.totalorder %s30_s16, 0  ;;  %p41_p2 = scmp.eq.s32.totalorder %s1404_s28, 0 }
   0xb   : > { %p322_p3 = scmp.eq.s32.totalorder %s1718_s29, 1  ;;  %p327_p4 = scmp.ne.s32.totalorder %s1396_s26, %s1392_s25 }
   0xc   : > { %s1519_s17 = scalar_select %p31_p1, %s1400_s27, %s33_s15  }
   0xd   : > { %p42_p5 = por %p41_p2, %p40_p0  ;;  %p1521_p6 = por %p322_p3, %p40_p0 }
   0xe   : > { %p328_p7 = scmp.eq.s32.totalorder %s1172_s30, 1  ;;  %p1174_p9 = scmp.ge.s32.totalorder %s1404_s28, 2 }
  0x10   : > { %p1525_p8 = por %p328_p7, %p327_p4  ;;  %380 = sbr.rel (%p1174_p9) target bundleno = 38 (0x26), region = 64 }
  0x17   : > { %383 = sbr.rel (!%p42_p5) target bundleno = 38 (0x26), region = 68  ;;  %s385_s20 = sand.u32 (%p42_p5), 1, %s1400_s27  }
  0x18   : > { %s1176_s21 = sshll.u32 (%p42_p5), %s1404_s28, 2  ;;  %s1175_s22 = sshll.u32 (%p42_p5), %s385_s20, 5 }
  0x19   : > { %s1724_s0 = sld [smem:[#allocation6_spill]] (%p42_p5)  ;;  %s387_s30 = scalar_lea.vmem (%p42_p5), [#allocation2], %s1175_s22 }
  0x1f   : > { %s389_s15 = scalar_lea.vmem %s1724_s0, %s1176_s21 }
  0x20   : > { %v405_v0 = vld [vmem:[%s389_s15] sm:$0xf]  ;;  %v407_v1 = vld [vmem:[%s389_s15 + $0x8] sm:$0xf]  ;;  %v409_v2 = vld [vmem:[%s389_s15 + $0x10] sm:$0xf] }
  0x21   : > { %406 = vst [vmem:[%s387_s30] sm:$0xf] %v405_v0  ;;  %408 = vst [vmem:[%s387_s30 + $0x4] sm:$0xf] %v407_v1  ;;  %v411_v3 = vld [vmem:[%s389_s15 + $0x18] sm:$0xf] }
  0x22   : > { %v413_v4 = vld [vmem:[%s389_s15 + $0x20] sm:$0xf]  ;;  %410 = vst [vmem:[%s387_s30 + $0x8] sm:$0xf] %v409_v2  ;;  %412 = vst [vmem:[%s387_s30 + $0xc] sm:$0xf] %v411_v3 }
  0x23   : > { %414 = vst [vmem:[%s387_s30 + $0x10] sm:$0xf] %v413_v4  ;;  %v415_v5 = vld [vmem:[%s389_s15 + $0x28] sm:$0xf]  ;;  %v417_v6 = vld [vmem:[%s389_s15 + $0x30] sm:$0xf] }
  0x24   : > { %v419_v7 = vld [vmem:[%s389_s15 + $0x38] sm:$0xf]  ;;  %416 = vst [vmem:[%s387_s30 + $0x14] sm:$0xf] %v415_v5  ;;  %418 = vst [vmem:[%s387_s30 + $0x18] sm:$0xf] %v417_v6 }
  0x25   : > { %420 = vst [vmem:[%s387_s30 + $0x1c] sm:$0xf] %v419_v7 }
  0x26 PF: > { %p1177_p10 = scmp.ge.s32.totalorder %s1404_s28, 1  ;;  %p458_p11 = scmp.lt.s32.totalorder %s1404_s28, 3 }
  0x28   : > { %p459_p12 = pnand %p1177_p10, %p458_p11 }
  0x29   : > { %s1540_s16 = sand.u32 (!%p459_p12), 1, %s1396_s26   ;;  %s1725_s1 = sld [smem:[#allocation7_spill]] (!%p459_p12)  ;;  %vm579_vm0 = vcmask (!%p459_p12), 523264   ;;  %v1406_v11 = vmov (!%p459_p12), 0   ;;  %v643_v16 = vld [vmem:[%s1708_s4] sm:$0xff] (!%p459_p12)  ;;  %v644_v20 = vld [vmem:[%s1708_s4 + $0x8] sm:$0xff] (!%p459_p12) }
  0x2a   : > { %462 = sbr.rel (%p459_p12) target bundleno = 1428 (0x594), region = 109  ;;  %s1178_s22 = sshll.u32 (!%p459_p12), %s1540_s16, 5  ;;  %1326 = vset.pattern.permute.xlu0 (!%p459_p12), %v1406_v11  ;;  %1327 = vset.pattern.permute.xlu1 (!%p459_p12), %v1406_v11  ;;  %v709_v19 = vld [vmem:[%s1710_s6] sm:$0xff] (!%p459_p12)  ;;  %v763_v22 = vld [vmem:[%s1712_s8 + $0x8] sm:$0xff] (!%p459_p12)  ;;  %v838_v26 = vld [vmem:[%s1714_s10 + $0x18] sm:$0xff] (!%p459_p12)  ;;  %v1407_v36 = vmov (!%p459_p12), 0.0  }
  0x2b   : > { %s1726_s2 = sld [smem:[#allocation8_spill]] (!%p459_p12)  ;;  %s467_s15 = scalar_lea.vmem (!%p459_p12), [#allocation2], %s1178_s22  ;;  %v762_v23 = vld [vmem:[%s1712_s8] sm:$0xff] (!%p459_p12)  ;;  %v836_v24 = vld [vmem:[%s1714_s10 + $0x8] sm:$0xff] (!%p459_p12)  ;;  %v837_v27 = vld [vmem:[%s1714_s10 + $0x10] sm:$0xff] (!%p459_p12)  ;;  %1243 = vmatprep.subr.bf16.mxu1 (!%p459_p12), %v1407_v36  ;;  %vm1408_vm1 = vmmov (!%p459_p12), 0  }
  0x2c   : > { %v1328_v10 = vld [vmem:[%s467_s15] sm:$0xff] (!%p459_p12)   ;;  %v1329_v12 = vld [vmem:[%s467_s15 + $0x8] sm:$0xff] (!%p459_p12)   ;;  %v1330_v14 = vld [vmem:[%s467_s15 + $0x10] sm:$0xff] (!%p459_p12)   ;;  %1247 = vmatprep.mubr.msk.bf16.mxu1 (!%p459_p12), %vm1408_vm1, %v1407_v36  ;;  %vm660_vm2 = vcmask (!%p459_p12), 261120   ;;  %vm715_vm3 = vcmask (!%p459_p12), 130048   ;;  %vm783_vm4 = vcmask (!%p459_p12), 1043456  }
  0x2d   : > { %1231 = vmatprep.subr.bf16.mxu0 (!%p459_p12), %v1328_v10  ;;  %v1331_v18 = vld [vmem:[%s467_s15 + $0x18] sm:$0xff] (!%p459_p12)   ;;  %v835_v25 = vld [vmem:[%s1714_s10] sm:$0xff] (!%p459_p12)  ;;  %v939_v28 = vld [vmem:[%s1716_s12 + $0x8] sm:$0xff] (!%p459_p12)  ;;  %vm779_vm5 = vcmask (!%p459_p12), 64512   ;;  %s1179_s29 = sshll.u32 (!%p459_p12), %s1540_s16, 6 }
  0x2e   : > { %1232 = vmatpush3.bf16.msra.mxu0 (!%p459_p12), %v1328_v10  ;;  %v938_v29 = vld [vmem:[%s1716_s12] sm:$0xff] (!%p459_p12)  ;;  %v941_v30 = vld [vmem:[%s1716_s12 + $0x18] sm:$0xff] (!%p459_p12)  ;;  %v940_v31 = vld [vmem:[%s1716_s12 + $0x10] sm:$0xff] (!%p459_p12)  ;;  %s507_s21 = scalar_lea.vmem (!%p459_p12), [#allocation3], %s1179_s29  ;;  %s1409_s29 = smov (!%p459_p12), [#allocation3]  }
  0x2f   : > { %v1332_v8 = vld [vmem:[%s1725_s1] sm:$0xff] (!%p459_p12)   ;;  %1233 = vmatprep.subr.bf16.mxu0 (!%p459_p12), %v1329_v12  ;;  %v1333_v21 = vld [vmem:[%s1725_s1 + $0x8] sm:$0xff] (!%p459_p12)   ;;  %v945_v34 = vld [vmem:[%s1716_s12 + $0x38] sm:$0xff] (!%p459_p12)  ;;  %s1104_s22 = sshll.u32 (!%p459_p12), %s507_s21, 4  ;;  %s1655_s22 = int_to_ptr.vmem [resolvable:$true] %s1104_s22 }
  0x30   : > { %1239 = vmatprep.mubr.msk.bf16.mxu0 (!%p459_p12), %vm579_vm0, %v1332_v8  ;;  %v943_v32 = vld [vmem:[%s1716_s12 + $0x28] sm:$0xff] (!%p459_p12)  ;;  %v942_v33 = vld [vmem:[%s1716_s12 + $0x20] sm:$0xff] (!%p459_p12)  ;;  %v944_v35 = vld [vmem:[%s1716_s12 + $0x30] sm:$0xff] (!%p459_p12)  ;;  %s1342_s20 = scalar_lea.vmem (!%p459_p12), %s1655_s22, 1024 }
  0x31   : > { %v521_v9 = vld [vmem:[%s1726_s2] sm:$0xff]  ;;  %v522_v13 = vld [vmem:[%s1726_s2 + $0x8] sm:$0xff]  ;;  %v523_v15 = vld [vmem:[%s1726_s2 + $0x10] sm:$0xff]  ;;  %p1343_p13 = scmp.ne.s32.totalorder %s1655_s22, %s1342_s20 }
  0x32   : > { %527 = vperm.xlu0 %1326, %v521_v9   ;;  %537 = vperm.xlu1 %1327, %v523_v15   ;;  %v524_v17 = vld [vmem:[%s1726_s2 + $0x18] sm:$0xff]  ;;  %v1334_v55 = vld [vmem:[%s1707_s3] sm:$0xff]   ;;  %s1727_s2 = sadd.s32 4294967295, %s1404_s28  }
  0x33   : > { %1234 = vmatpush3.bf16.msra.mxu0 %v1329_v12  ;;  %v708_v3 = vld [vmem:[%s1709_s5] sm:$0xf]  ;;  %s1206_s23 = sshll.u32 %s1727_s2, 7  ;;  %p1344_p0 = pnand %p1343_p13, %p1521_p6 }
  0x34   : > { %1235 = vmatprep.subr.bf16.mxu0 %v1330_v14  ;;  %v1335_v12 = vld [vmem:[%s1711_s7] sm:$0xff]   ;;  %s1660_s15 = scalar_lea.hbm %s1717_s13, %s1206_s23  ;;  %s1346_s2 = sshll.u32 %s1409_s29, 4  ;;  %s1347_s2 = int_to_ptr.vmem [resolvable:$false] %s1346_s2 }
  0x35   : > { %p1345_p1 = pneg %p1344_p0  ;;  %s1348_s1 = scalar_lea.vmem %s1347_s2, 2048 }
  0x36   : > { %532 = vperm.xlu0 %1326, %v522_v13   ;;  %542 = vperm.xlu1 %1327, %v524_v17   ;;  %v1336_v13 = vld [vmem:[%s1713_s9] sm:$0xff]   ;;  %p1349_p2 = scmp.lt.s32.totalorder %s1655_s22, %s1347_s2  ;;  %p1350_p3 = scmp.lt.s32.totalorder %s1348_s1, %s1342_s20 }
  0x37   : > { %1236 = vmatpush3.bf16.msra.mxu0 %v1330_v14 }
  0x38   : > { %1237 = vmatprep.subr.bf16.mxu0 %v1331_v18  ;;  %p1351_p4 = por %p1350_p3, %p1349_p2 }
  0x3a   : > { %647 = vperm.xlu0 %1326, %v643_v16   ;;  %652 = vperm.xlu1 %1327, %v644_v20   ;;  %p1352_p5 = pnand %p1351_p4, %p1345_p1 }
  0x3b   : > { %1238 = vmatpush3.bf16.msra.mxu0 %v1331_v18 }
  0x3e   : > { %712 = vperm.xlu0 %1326, %v709_v19   ;;  %766 = vperm.xlu1 %1327, %v762_v23  }
  0x3f   : > { %1240 = vmatmul.mubr.msk.bf16.vlgmr.msra.gmra.mrb[0].mxu0 %vm579_vm0, %v1333_v21 }
  0x42   : > { %771 = vperm.xlu0 %1326, %v763_v22   ;;  %841 = vperm.xlu1 %1327, %v835_v25   ;;  %v1337_v25 = vld [vmem:[%s1713_s9 + $0x8] sm:$0xff]  }
  0x46   : > { %846 = vperm.xlu0 %1326, %v836_v24   ;;  %851 = vperm.xlu1 %1327, %v837_v27  }
  0x4a   : > { %856 = vperm.xlu0 %1326, %v838_v26   ;;  %948 = vperm.xlu1 %1327, %v938_v29   ;;  %v1338_v26 = vld [vmem:[%s1715_s11] sm:$0xff]  }
  0x4b   : > { %1273 = vmatprep.mubr.msk.bf16.mxu0 %vm660_vm2, %v1338_v26 }
  0x4e   : > { %953 = vperm.xlu0 %1326, %v939_v28   ;;  %958 = vperm.xlu1 %1327, %v940_v31  }
  0x52   : > { %963 = vperm.xlu0 %1326, %v941_v30   ;;  %968 = vperm.xlu1 %1327, %v942_v33  }
  0x56   : > { %973 = vperm.xlu0 %1326, %v943_v32   ;;  %978 = vperm.xlu1 %1327, %v944_v35  }
  0x5a   : > { %983 = vperm.xlu0 %1326, %v945_v34  }
  0xb1   : > { %v538_v37 = vpop.permute.xlu1 %537  ;;  %v528_v38 = vpop.permute.xlu0 %527 }
  0xb5   : > { %v543_v42 = vpop.permute.xlu1 %542  ;;  %v533_v45 = vpop.permute.xlu0 %532 }
  0xb9   : > { %v648_v56 = vpop.permute.xlu0 %647  ;;  %v653_v60 = vpop.permute.xlu1 %652 }
  0xbd   : > { %v713_v4 = vpop.permute.xlu0 %712  ;;  %v767_v14 = vpop.permute.xlu1 %766 }
  0xc1   : > { %v772_v18 = vpop.permute.xlu0 %771  ;;  %v842_v27 = vpop.permute.xlu1 %841 }
  0xc5   : > { %v847_v28 = vpop.permute.xlu0 %846  ;;  %v852_v29 = vpop.permute.xlu1 %851 }
  0xc9   : > { %v857_v33 = vpop.permute.xlu0 %856 }
 0x112   : > { %v1241_v39 = vpop.f32.mrb[0].mxu0 }
 0x113   : > { %v629_v40 = vadd.f32 %v1241_v39, %v538_v37  ;;  %v620_v41 = vpop.f32.mrb[1].mxu0 }
 0x114   : > { %v621_v43 = vadd.f32 %v620_v41, %v528_v38  ;;  %v1242_v44 = vpop.f32.mrb[2].mxu0 }
 0x115   : > { %v632_v46 = vadd.f32 %v1242_v44, %v543_v42  ;;  %v623_v47 = vpop.f32.mrb[3].mxu0  ;;  %v637_v49 = vmax.f32 %v629_v40, 0.0 }
 0x116   : > { %v624_v48 = vadd.f32 %v623_v47, %v533_v45  ;;  %v635_v51 = vmax.f32 %v621_v43, 0.0  ;;  %v1339_v45 = vld [vmem:[%s1715_s11 + $0x8] sm:$0xff]   ;;  %v1341_v47 = vld [vmem:[%s1715_s11 + $0x18] sm:$0xff]  }
 0x117   : > { %v638_v50 = vmax.f32 %v632_v46, 0.0  ;;  %v1340_v46 = vld [vmem:[%s1715_s11 + $0x10] sm:$0xff]  }
 0x118   : > { %v636_v52 = vmax.f32 %v624_v48, 0.0  ;;  %v949_v48 = vpop.permute.xlu1 %948 }
 0x119   : > { %v640_v53 = vpack.c.bf16 %v638_v50, %v637_v49  ;;  %v954_v49 = vpop.permute.xlu0 %953 }
 0x11a   : > { %v639_v54 = vpack.c.bf16 %v636_v52, %v635_v51 }
 0x11c   : > { %1244 = vmatpush3.bf16.msra.mxu1 %v639_v54  ;;  %v959_v50 = vpop.permute.xlu1 %958 }
 0x11d   : > { %1245 = vmatprep.subr.bf16.mxu1 %v1407_v36  ;;  %v964_v51 = vpop.permute.xlu0 %963 }
 0x120   : > { %1246 = vmatpush3.bf16.msra.mxu1 %v640_v53 }
 0x121   : > { %1251 = vmatprep.subr.bf16.mxu1 %v1407_v36 }
 0x123   : > { %1248 = vmatmul.mubr.msk.bf16.vlgmr.msra.gmra.mrb[0].mxu1 %vm660_vm2, %v1334_v55  ;;  %v969_v55 = vpop.permute.xlu1 %968 }
 0x124   : > { %1253 = vmatprep.mubr.msk.bf16.mxu1 %vm1408_vm1, %v1407_v36 }
 0x1f6   : > { %v698_v57 = vpop.f32.mrb[0].mxu1 }
 0x1f7   : > { %v699_v58 = vadd.f32 %v698_v57, %v648_v56  ;;  %v1249_v59 = vpop.f32.mrb[1].mxu1 }
 0x1f8   : > { %v701_v61 = vpop.f32.mrb[2].mxu1 }
 0x1f9   : > { %v702_v62 = vadd.f32 %v701_v61, %v653_v60  ;;  %v1250_v63 = vpop.f32.mrb[3].mxu1  ;;  %v705_v0 = vmax.f32 %v699_v58, 0.0  ;;  %v974_v60 = vpop.permute.xlu0 %973 }
 0x1fb   : > { %v706_v1 = vmax.f32 %v702_v62, 0.0  ;;  %v979_v62 = vpop.permute.xlu1 %978 }
 0x1fd   : > { %v707_v2 = vpack.c.bf16 %v706_v1, %v705_v0 }
 0x1ff   : > { %1252 = vmatpush3.bf16.msra.mxu1 %v707_v2  ;;  %v984_v2 = vpop.permute.xlu0 %983 }
 0x200   : > { %1257 = vmatprep.subr.bf16.mxu1 %v1407_v36 }
 0x202   : > { %1254 = vmatmul.mubr.msk.bf16.vlgmr.msra.gmra.mrb[4].mxu1 %vm715_vm3, %v708_v3 }
 0x203   : > { %1259 = vmatprep.mubr.msk.bf16.mxu1 %vm1408_vm1, %v1407_v36 }
 0x2d5   : > { %v753_v5 = vpop.f32.mrb[4].mxu1 }
 0x2d6   : > { %v754_v6 = vadd.f32 %v753_v5, %v713_v4  ;;  %v1255_v7 = vpop.f32.mrb[5].mxu1 }
 0x2d7   : > { %v756_v8 = vpop.f32.mrb[6].mxu1 }
 0x2d8   : > { %v759_v9 = vpack.c.bf16 %v754_v6, %v754_v6  ;;  %v1256_v10 = vpop.f32.mrb[7].mxu1 }
 0x2da   : > { %v785_v11 = vsel %vm783_vm4, %v759_v9, 0 }
 0x2db   : > { %1258 = vmatpush3.bf16.msra.mxu1 %v785_v11 }
 0x2de   : > { %1260 = vmatmul.mubr.msk.bf16.vlgmr.msra.gmra.mrb[8].mxu1 %vm779_vm5, %v1335_v12 }
 0x2df   : > { %1265 = vmatprep.mubr.msk.bf16.mxu1 %vm715_vm3, %v1336_v13 }
 0x3b1   : > { %v821_v15 = vpop.f32.mrb[8].mxu1 }
 0x3b2   : > { %v822_v16 = vadd.f32 %v821_v15, %v767_v14  ;;  %v1261_v17 = vpop.f32.mrb[9].mxu1 }
 0x3b3   : > { %v824_v19 = vpop.f32.mrb[10].mxu1 }
 0x3b4   : > { %v825_v20 = vadd.f32 %v824_v19, %v772_v18  ;;  %v1262_v21 = vpop.f32.mrb[11].mxu1  ;;  %v828_v22 = vmax.f32 %v822_v16, 0.0 }
 0x3b6   : > { %v829_v23 = vmax.f32 %v825_v20, 0.0 }
 0x3b8   : > { %v830_v24 = vpack.c.bf16 %v829_v23, %v828_v22 }
 0x3ba   : > { %1263 = vmatprep.subr.bf16.mxu1 %v830_v24 }
 0x3bb   : > { %1264 = vmatpush3.bf16.msra.mxu1 %v830_v24 }
 0x3be   : > { %1266 = vmatmul.mubr.msk.bf16.vlgmr.msra.gmra.mrb[12].mxu1 %vm715_vm3, %v1337_v25 }
 0x491   : > { %v1267_v30 = vpop.f32.mrb[12].mxu1 }
 0x492   : > { %v918_v31 = vadd.f32 %v1267_v30, %v852_v29  ;;  %v909_v32 = vpop.f32.mrb[13].mxu1 }
 0x493   : > { %v910_v34 = vadd.f32 %v909_v32, %v842_v27  ;;  %v1268_v35 = vpop.f32.mrb[14].mxu1 }
 0x494   : > { %v921_v36 = vadd.f32 %v1268_v35, %v857_v33  ;;  %v912_v37 = vpop.f32.mrb[15].mxu1  ;;  %v926_v39 = vmax.f32 %v918_v31, 0.0 }
 0x495   : > { %v913_v38 = vadd.f32 %v912_v37, %v847_v28  ;;  %v924_v41 = vmax.f32 %v910_v34, 0.0 }
 0x496   : > { %v927_v40 = vmax.f32 %v921_v36, 0.0 }
 0x497   : > { %v925_v42 = vmax.f32 %v913_v38, 0.0 }
 0x498   : > { %v929_v43 = vpack.c.bf16 %v927_v40, %v926_v39 }
 0x499   : > { %v928_v44 = vpack.c.bf16 %v925_v42, %v924_v41 }
 0x49b   : > { %1269 = vmatprep.subr.bf16.mxu0 %v928_v44 }
 0x49c   : > { %1270 = vmatpush3.bf16.msra.mxu0 %v928_v44 }
 0x49d   : > { %1271 = vmatprep.subr.bf16.mxu0 %v929_v43 }
 0x4a0   : > { %1272 = vmatpush3.bf16.msra.mxu0 %v929_v43 }
 0x4a3   : > { %1274 = vmatmul.mubr.msk.bf16.vlgmr.msra.gmra.mrb[4].mxu0 %vm660_vm2, %v1339_v45 }
 0x4a4   : > { %1277 = vmatprep.mubr.msk.bf16.mxu0 %vm660_vm2, %v1340_v46 }
 0x4ab   : > { %1278 = vmatmul.mubr.msk.bf16.gmra.mrb[8].mxu0 %vm660_vm2, %v1341_v47 }
 0x576   : > { %v1275_v52 = vpop.f32.mrb[4].mxu0 }
 0x577   : > { %v1061_v53 = vadd.f32 %v1275_v52, %v959_v50  ;;  %v1052_v54 = vpop.f32.mrb[5].mxu0 }
 0x578   : > { %v1053_v56 = vadd.f32 %v1052_v54, %v949_v48  ;;  %v1276_v57 = vpop.f32.mrb[6].mxu0 }
 0x579   : > { %1085 = vst [vmem:[%s507_s21 + $0x10] sm:$0xff] %v1061_v53  ;;  %v1064_v58 = vadd.f32 %v1276_v57, %v964_v51  ;;  %v1055_v59 = vpop.f32.mrb[7].mxu0 }
 0x57a   : > { %1083 = vst [vmem:[%s507_s21] sm:$0xff] %v1053_v56  ;;  %v1056_v61 = vadd.f32 %v1055_v59, %v954_v49 }
 0x57b   : > { %1086 = vst [vmem:[%s507_s21 + $0x18] sm:$0xff] %v1064_v58 }
 0x57c   : > { %1084 = vst [vmem:[%s507_s21 + $0x8] sm:$0xff] %v1056_v61 }
 0x57e   : > { %v1279_v63 = vpop.f32.mrb[8].mxu0 }
 0x57f   : > { %v1077_v0 = vadd.f32 %v1279_v63, %v979_v62  ;;  %v1068_v1 = vpop.f32.mrb[9].mxu0 }
 0x580   : > { %v1069_v3 = vadd.f32 %v1068_v1, %v969_v55  ;;  %v1280_v4 = vpop.f32.mrb[10].mxu0 }
 0x581   : > { %1089 = vst [vmem:[%s507_s21 + $0x30] sm:$0xff] %v1077_v0  ;;  %v1080_v5 = vadd.f32 %v1280_v4, %v984_v2  ;;  %v1071_v6 = vpop.f32.mrb[11].mxu0 }
 0x582   : > { %1087 = vst [vmem:[%s507_s21 + $0x20] sm:$0xff] %v1069_v3  ;;  %v1072_v7 = vadd.f32 %v1071_v6, %v974_v60 }
 0x583   : > { %1090 = vst [vmem:[%s507_s21 + $0x38] sm:$0xff] %v1080_v5 }
 0x584   : > { %1088 = vst [vmem:[%s507_s21 + $0x28] sm:$0xff] %v1072_v7 }
 0x585   : > { %1355 = shalt.err (!%p1352_p5)
}
 0x586   : > { %s1356_s21 = scalar_lea.hbm %s1660_s15, 1024  ;;  %s1360_s24 = scalar_lea.hbm %s1717_s13, 2048 }
 0x587   : > { %p1357_p7 = scmp.ne.s32.totalorder %s1660_s15, %s1356_s21  ;;  %p1361_p12 = scmp.lt.u32.totalorder %s1660_s15, %s1717_s13 }
 0x588   : > { %p1362_p13 = scmp.lt.u32.totalorder %s1360_s24, %s1356_s21  ;;  %p1364_p1 = scmp.lt.u32.totalorder %s1356_s21, %s1660_s15 }
 0x589   : > { %p1358_p10 = pnand %p1357_p7, %p1521_p6 }
 0x58a   : > { %p1363_p0 = por %p1362_p13, %p1361_p12 }
 0x58b   : > { %p1359_p11 = pneg %p1358_p10 }
 0x58c   : > { %p1365_p2 = por %p1364_p1, %p1363_p0 }
 0x58e   : > { %p1366_p3 = pnand %p1365_p2, %p1359_p11 }
 0x590   : > { %1369 = shalt.err (!%p1366_p3)
}
 0x591   : > { %s1410_s1 = smov 128   ;;  %s1411_s20 = smov 256  }
 0x592   : > { %s1412_s30 = smov 8   ;;  %s1728_s23 = scalar_lea.sflag [#allocation4], %s1540_s16 }
 0x593   : > { %1281 = dma.vmem_to_hbm [thread:$0]  (%p1521_p6), %s1655_s22, 1024, %s1660_s15, %s1728_s23, %s1410_s1, %s1411_s20, %s1412_s30  }
 0x594 PF: > { %s1119_s0 = sand.u32 1, %s1392_s25   ;;  %p1284_p4 = pnand %p1174_p9, %p1525_p8 }
 0x595   : > { %s1120_s21 = scalar_lea.sflag [#allocation4], %s1119_s0 }
 0x596   : > { %1387 = dma.done.wait (!%p1284_p4), %s1120_s21, 1024  }
 0x597   : > { %1389 = vsyncadd (!%p1284_p4), %s1120_s21, 4294966272  ;;  %p23_p5 = scmp.ge.s32.totalorder %s1506_s14, 4   ;;  %s1729_s25 = smov %s1396_s26 }
 0x598   : > { %s1730_s26 = smov %s1400_s27  ;;  %s1731_s27 = smov %s1519_s17 }
 0x599   : > { %s1732_s28 = smov %s1506_s14  ;;  %25 = sbr.rel (!%p23_p5) target bundleno = 7 (0x7), region = 153 }
 0x5a0   :  { %1125 = vsyncpa [#allocation4], 1 }
 0x5a1   :  { %1127 = vsyncpa [#allocation4 + $0x1], 1 }

</bundles_post_ra>
